<compile_context>
chip_gen: v5e
topology: v5e:2x2
jax: 0.10.0
libtpu: 0.0.40
codegen_flags: <defaults>
</compile_context>

<pallas_src>
import functools

import numpy as np
import jax
import jax.numpy as jnp
from jax.experimental import pallas as pl
from jax.experimental.pallas import tpu as pltpu


def _round_up(x, m):
    return ((x + m - 1) // m) * m


def _tpu_vmem_capacity_bytes():
    """Physical VMEM per TensorCore; conservative (v7x) fallback."""
    try:
        info = pltpu.get_tpu_info()
        cap = getattr(info, "vmem_capacity_bytes", None)
        if cap:
            return int(cap)
    except Exception:
        pass
    return 64 << 20


# =============================================================================
# Geometry helpers (ported from SparseyLayerOld; plain Python glue).
# =============================================================================
def compute_mac_positions(num_macs, rows, cols, grid_layout):
    positions = []
    global_col_offset = 0.5 if grid_layout == "hex" else 0
    grid_col_spacing = 0.0
    if rows == 1:
        row_locations = [0.5]
    else:
        row_spacing = 1 / (rows - 1)
        row_locations = [i * row_spacing for i in range(rows)]
    if cols == 1:
        col_locations = [0.5]
    else:
        grid_col_spacing = 1 / (cols - 1)
        col_locations = [i * grid_col_spacing for i in range(cols)]
    for i in range(num_macs):
        positions.append((
            row_locations[i // cols],
            col_locations[i % cols]
            + global_col_offset * (i % rows % 2) * grid_col_spacing,
        ))
    return positions


def find_connected_macs(mac_positions, prev_positions, radius):
    conns = []
    for p in mac_positions:
        conn = [
            j for j, q in enumerate(prev_positions)
            if (abs(p[0] - q[0]) ** 2 + abs(p[1] - q[1]) ** 2) ** 0.5 <= radius
        ]
        conns.append(conn)
    return conns


# =============================================================================
# Pallas kernel: grid = (num_macs, batch tiles, K tiles).
# =============================================================================
def _sparsey_mac_kernel(nk_m_ref, x_ref, w_ref, act_ref, o_ref, acc_ref,
                        *, num_cms, num_neurons, cn_pad):
    kt = pl.program_id(2)
    nk = pl.num_programs(2)
    nk_valid = nk_m_ref[pl.program_id(0)]           # per-MAC valid K-tile count (SMEM)

    @pl.when(kt == 0)
    def _init():
        acc_ref[...] = jnp.zeros_like(acc_ref)

    # Ragged K: skip zero-padded tail tiles entirely (their DMA is also suppressed by
    # the clamped index_map, which re-uses the resident block).
    @pl.when(kt < nk_valid)
    def _step():
        acc_ref[...] += jnp.dot(x_ref[0], w_ref[0],
                                preferred_element_type=jnp.float32)

    @pl.when(kt == nk - 1)
    def _finalize():
        # The torch module normalizes x by its row sum before the matmul; that is a
        # row-uniform positive scale, so the per-CM argmax (and hence the 0/1 one-hot
        # output) is identical on the unnormalized accumulator -> no divide/nan_to_num.
        y = acc_ref[...]                                        # (bt, cn_pad) f32
        bt = y.shape[0]

        # Lane iota hoisted out of the CM loop (JAX does not CSE broadcasts).
        col = jax.lax.broadcasted_iota(jnp.int32, (bt, cn_pad), 1)
        neg_inf = jnp.float32(-jnp.inf)
        onehot = jnp.zeros((bt, cn_pad), jnp.float32)
        for c in range(num_cms):                                # small static VPU loop
            lo = c * num_neurons
            hi = lo + num_neurons
            in_cm = jnp.logical_and(col >= lo, col < hi)
            yc = jnp.where(in_cm, y, neg_inf)
            ymax = jnp.max(yc, axis=-1, keepdims=True)
            first = jnp.min(jnp.where(yc == ymax, col, cn_pad),
                            axis=-1, keepdims=True)             # first-occurrence argmax
            onehot = onehot + (col == first).astype(jnp.float32)

        # Single lane-dense bf16 store (values are exactly 0/1).
        o_ref[0] = (onehot * act_ref[0]).astype(o_ref.dtype)

    # TODO(synk): training-mode path (sigmoid familiarity logits + Categorical
    # sampling + stored_codes set) is stochastic / stateful; only the eval
    # (argmax) path is implemented.


# =============================================================================
# Layer wrapper (parameter setup + gather glue + pallas_call).
# =============================================================================
class SparseyLayerPallasOld:
    def __init__(self, *, grid_layout, num_macs, num_cms_per_mac, num_neurons_per_cm,
                 mac_grid_num_rows, mac_grid_num_cols, mac_receptive_field_size,
                 prev_layer_num_cms_per_mac, prev_layer_num_neurons_per_cm,
                 prev_layer_mac_grid_num_rows, prev_layer_mac_grid_num_cols,
                 prev_layer_num_macs, prev_layer_grid_layout,
                 activation_threshold_min, activation_threshold_max,
                 batch_tile=256, seed=0):
        self.num_macs = num_macs
        self.num_cms = num_cms_per_mac
        self.num_neurons = num_neurons_per_cm
        self.grid_size = (mac_grid_num_rows, mac_grid_num_cols)
        self.prev_cms = prev_layer_num_cms_per_mac
        self.prev_neurons = prev_layer_num_neurons_per_cm
        self.prev_num_macs = prev_layer_num_macs
        self.prev_layer_output_shape = (
            prev_layer_mac_grid_num_rows, prev_layer_mac_grid_num_cols,
            prev_layer_num_cms_per_mac, prev_layer_num_neurons_per_cm)
        # Batch tile (M-dim of the MXU matmul). ~256 fills the v6e/v7x MXU; ~128 is
        # enough on v5e. Must be a multiple of 8.
        self.batch_tile = _round_up(max(int(batch_tile), 8), 8)

        positions = compute_mac_positions(
            num_macs, mac_grid_num_rows, mac_grid_num_cols, grid_layout)
        prev_positions = compute_mac_positions(
            prev_layer_num_macs, prev_layer_mac_grid_num_rows,
            prev_layer_mac_grid_num_cols, prev_layer_grid_layout)
        self.input_connections = find_connected_macs(
            positions, prev_positions, mac_receptive_field_size)

        lengths = np.array([len(c) for c in self.input_connections], dtype=np.int32)
        if np.any(lengths == 0):
            raise ValueError("MAC input connection list cannot be empty!")
        self.lmax = int(lengths.max())
        self.feat = self.prev_cms * self.prev_neurons
        self.k = self.lmax * self.feat

        # Receptive-field gather indices + validity mask (ragged -> zero-padded).
        gather_idx = np.zeros((num_macs, self.lmax), dtype=np.int32)
        mask = np.zeros((num_macs, self.lmax), dtype=np.float32)
        for i, conn in enumerate(self.input_connections):
            gather_idx[i, :len(conn)] = np.array(conn, dtype=np.int32)
            mask[i, :len(conn)] = 1.0
        self.gather_idx = jnp.asarray(gather_idx)
        self.mask = jnp.asarray(mask)

        # ---- Per-generation tile sizing (weight stream is the dominant HBM traffic).
        self.vmem_cap = _tpu_vmem_capacity_bytes()
        self.cn = self.num_cms * self.num_neurons
        self.cn_pad = _round_up(self.cn, 128)
        gran = 256                               # K-tile granularity (MXU cadence)
        # Single-buffer bf16 weight-block budget: ~12 MiB on 128-MiB-VMEM chips
        # (v5e/v6e), ~5 MiB on 64-MiB chips (v7x).
        w_budget = (12 << 20) if self.vmem_cap >= (96 << 20) else (5 << 20)
        tk_cap = (w_budget // (self.cn_pad * 2)) // gran * gran
        tk_cap = max(gran, min(8192, tk_cap))
        self.nk = max(1, -(-self.k // tk_cap))
        self.tk = _round_up(-(-self.k // self.nk), gran)
        self.k_pad = self.tk * self.nk

        # Per-MAC valid K-tile count (ragged receptive fields -> skip padded tail).
        nk_m = np.maximum(1, -(-(lengths.astype(np.int64) * self.feat) // self.tk))
        self.nk_m = jnp.asarray(nk_m.astype(np.int32))

        # Deterministic synthetic weights (torch.rand equivalent: U[0,1)); stored in
        # bf16 to halve weight HBM traffic (matmul still accumulates in f32).
        master = jax.random.uniform(
            jax.random.PRNGKey(seed),
            (num_macs, self.num_cms, self.k, self.num_neurons), dtype=jnp.float32)
        self.weights_bf16 = master.astype(jnp.bfloat16)        # logical (M, C, K, N)
        # Fused lane-dense kernel layout: (M, K_pad, CN_pad) bf16.
        wk = jnp.transpose(self.weights_bf16, (0, 2, 1, 3)).reshape(
            num_macs, self.k, self.cn)
        self.w_fused = jnp.pad(
            wk, ((0, 0), (0, self.k_pad - self.k), (0, self.cn_pad - self.cn)))
        # TODO(synk): optional fp8 (e4m3) weights on v7x would halve the weight stream
        # again but can flip near-ties in the argmax vs the bf16 reference.

        self.thr_min = jnp.asarray(
            lengths.astype(np.float32) * np.float32(activation_threshold_min))
        self.thr_max = jnp.asarray(
            lengths.astype(np.float32) * np.float32(activation_threshold_max))

    def __call__(self, x):
        if tuple(x.shape[1:]) != self.prev_layer_output_shape:
            raise ValueError(
                f"Input shape is incorrect! Expected {self.prev_layer_output_shape} "
                f"but got {tuple(x.shape[1:])}.")
        batch = x.shape[0]
        bt = min(self.batch_tile, _round_up(max(batch, 1), 8))
        b_pad = _round_up(max(batch, 1), bt)
        nb = b_pad // bt

        xf = x.reshape(batch, self.prev_num_macs, self.feat)
        # Receptive-field gather (wrapper glue): ragged filters zero-padded to Lmax.
        # TODO(synk): in-kernel gather (scalar-prefetch gather_idx + manual DMA) would
        # avoid duplicating the input ~Lmax x in HBM; only worth it for large feat*bt.
        xg = xf[:, self.gather_idx]                            # (B, M, Lmax, feat) f32
        xg = xg * self.mask[None, :, :, None]

        # Activity gate precomputed on the tiny (B, M) tensor in f32 (exact sum), so
        # the kernel steady-state is pure matmul + DMA.
        s = jnp.sum(xg, axis=(2, 3))                           # (B, M) f32
        active = s / float(self.prev_cms)
        is_active = jnp.logical_and(active <= self.thr_max[None, :],
                                    active >= self.thr_min[None, :]).astype(jnp.float32)
        is_active = jnp.pad(jnp.transpose(is_active, (1, 0)),
                            ((0, 0), (0, b_pad - batch)))[..., None]  # (M, B_pad, 1)

        # bf16 gather operand (exact for 0/1 codes): halves x HBM DMA + VMEM buffers.
        xg = xg.astype(jnp.bfloat16)
        xg = jnp.transpose(xg, (1, 0, 2, 3)).reshape(self.num_macs, batch, self.k)
        xg = jnp.pad(xg, ((0, 0), (0, b_pad - batch), (0, self.k_pad - self.k)))

        kernel = functools.partial(
            _sparsey_mac_kernel,
            num_cms=self.num_cms, num_neurons=self.num_neurons, cn_pad=self.cn_pad)

        # VMEM budget with the batch tile (not full b_pad): double-buffered bf16
        # input/weight/output blocks + f32 accumulator + lane-padded gate blocks.
        est = (2 * bt * self.tk * 2              # xg blocks (bf16), double-buffered
               + 2 * self.tk * self.cn_pad * 2   # weight blocks (bf16), double-buffered
               + 2 * bt * self.cn_pad * 2        # output blocks (bf16), double-buffered
               + 2 * bt * 128 * 4                # is_active blocks (lane-padded)
               + bt * self.cn_pad * 4)           # acc scratch (f32)
        if self.vmem_cap >= (96 << 20):          # v5e / v6e: 128 MiB physical VMEM
            vmem_limit = int(min(est + (8 << 20), 96 << 20)) if est > (12 << 20) else None
        else:                                    # v7x: 64 MiB physical, 32 MiB scoped
            vmem_limit = int(min(est + (8 << 20), 48 << 20)) if est > (24 << 20) else None

        out = pl.pallas_call(
            kernel,
            out_shape=jax.ShapeDtypeStruct(
                (self.num_macs, b_pad, self.cn_pad), jnp.bfloat16),
            grid_spec=pltpu.PrefetchScalarGridSpec(
                num_scalar_prefetch=1,
                grid=(self.num_macs, nb, self.nk),
                in_specs=[
                    # Clamp the K block index to the per-MAC valid tile count so the
                    # zero-padded tail is never DMA'd (resident block is re-used).
                    pl.BlockSpec((1, bt, self.tk),
                                 lambda m, b, kt, nkm: (m, b,
                                                        jnp.minimum(kt, nkm[m] - 1))),
                    pl.BlockSpec((1, self.tk, self.cn_pad),
                                 lambda m, b, kt, nkm: (m,
                                                        jnp.minimum(kt, nkm[m] - 1), 0)),
                    pl.BlockSpec((1, bt, 1),
                                 lambda m, b, kt, nkm: (m, b, 0)),
                ],
                out_specs=pl.BlockSpec((1, bt, self.cn_pad),
                                       lambda m, b, kt, nkm: (m, b, 0)),
                scratch_shapes=[pltpu.VMEM((bt, self.cn_pad), jnp.float32)],
            ),
            compiler_params=pltpu.CompilerParams(
                dimension_semantics=("parallel", "parallel", "arbitrary"),
                vmem_limit_bytes=vmem_limit),
        )(self.nk_m, xg, self.w_fused, is_active)

        out = out[:, :batch, :self.cn]                         # drop pad rows / lanes
        out = jnp.transpose(out, (1, 0, 2))
        return out.reshape(
            batch, *self.grid_size, self.num_cms, self.num_neurons).astype(jnp.float32)


# =============================================================================
# Pure-JAX reference (mirrors the torch math, eval path) for verification.
# Uses the same bf16-quantized weights as the kernel so argmax decisions match.
# =============================================================================
def reference_forward(layer, x):
    batch = x.shape[0]
    xf = x.reshape(batch, layer.prev_num_macs, layer.prev_cms, layer.prev_neurons)
    feat = layer.prev_cms * layer.prev_neurons
    outs = []
    for i, conn in enumerate(layer.input_connections):
        l = len(conn)
        xi = xf[:, jnp.asarray(conn, dtype=jnp.int32)]            # (B, L, cms, neur)
        active = xi.sum(axis=(1, 2, 3)) / layer.prev_cms
        is_active = jnp.logical_and(active <= layer.thr_max[i],
                                    active >= layer.thr_min[i]).astype(jnp.float32)
        xv = xi.reshape(batch, -1)
        s = xv.sum(axis=-1, keepdims=True)
        xv = jnp.nan_to_num(xv / s)
        wi = layer.weights_bf16[i, :, :l * feat, :].astype(jnp.float32)  # (C, L*feat, N)
        y = jnp.einsum("bk,ckn->bcn", xv, wi,
                       precision=jax.lax.Precision.HIGHEST)       # (B, C, N)
        idx = jnp.argmax(y, axis=2)
        onehot = jax.nn.one_hot(idx, layer.num_neurons, dtype=jnp.float32)
        outs.append(onehot * is_active[:, None, None])
    out = jnp.stack(outs, axis=1)
    return out.reshape(batch, *layer.grid_size, layer.num_cms, layer.num_neurons)


if __name__ == "__main__":
    B = 2
    prev_rows, prev_cols = 3, 3
    prev_cms, prev_neur = 2, 2
    rows, cols = 2, 2
    num_macs = rows * cols
    num_cms, num_neurons = 3, 4

    layer = SparseyLayerPallasOld(
        grid_layout="rect",
        num_macs=num_macs,
        num_cms_per_mac=num_cms,
        num_neurons_per_cm=num_neurons,
        mac_grid_num_rows=rows,
        mac_grid_num_cols=cols,
        mac_receptive_field_size=0.6,
        prev_layer_num_cms_per_mac=prev_cms,
        prev_layer_num_neurons_per_cm=prev_neur,
        prev_layer_mac_grid_num_rows=prev_rows,
        prev_layer_mac_grid_num_cols=prev_cols,
        prev_layer_num_macs=prev_rows * prev_cols,
        prev_layer_grid_layout="rect",
        activation_threshold_min=0.2,
        activation_threshold_max=1.0,
        seed=0,
    )

    key = jax.random.PRNGKey(0)
    idx = jax.random.randint(key, (B, prev_rows, prev_cols, prev_cms), 0, prev_neur)
    x = jax.nn.one_hot(idx, prev_neur, dtype=jnp.float32)  # sparse one-hot codes
    # Deactivate some previous-layer MACs for batch element 1 to exercise is_active.
    x = x.at[1, 2, :, :, :].set(0.0)
    x = x.at[1, :, 2, :, :].set(0.0)

    out = layer(x)
    out = jax.block_until_ready(out)

    ref = reference_forward(layer, x)
    np.testing.assert_allclose(np.asarray(out), np.asarray(ref), rtol=1e-5, atol=1e-5)
    print("KERNEL_OK")
</pallas_src>

<mosaic_0001>
module attributes {stable_mosaic.version = 11 : i64} {
  func.func @_sparsey_mac_kernel(%arg0: i32, %arg1: i32, %arg2: i32, %arg3: memref<4xi32, #tpu.memory_space<smem>>, %arg4: memref<1x8x256xbf16, #tpu.memory_space<vmem>>, %arg5: memref<1x256x128xbf16, #tpu.memory_space<vmem>>, %arg6: memref<1x8x1xf32, #tpu.memory_space<vmem>>, %arg7: memref<1x8x128xbf16, #tpu.memory_space<vmem>>, %arg8: memref<8x128xf32, #tpu.memory_space<vmem>>) attributes {dimension_semantics = [#tpu.dimension_semantics<parallel>, #tpu.dimension_semantics<parallel>, #tpu.dimension_semantics<arbitrary>], iteration_bounds = array<i64: 4, 1, 1>, scalar_prefetch = 1 : i64, scratch_operands = 1 : i64, tpu.core_type = #tpu.core_type<tc>, window_params = [{transform_indices = @transform_0, window_bounds = array<i64: 1, 8, 256>}, {transform_indices = @transform_1, window_bounds = array<i64: 1, 256, 128>}, {transform_indices = @transform_2, window_bounds = array<i64: 1, 8, 1>}, {transform_indices = @transform_3, window_bounds = array<i64: 1, 8, 128>}]} {
    %0 = arith.index_cast %arg0 : i32 to index
    %1 = memref.load %arg3[%0] : memref<4xi32, #tpu.memory_space<smem>>
    %c0_i32 = arith.constant 0 : i32
    %2 = arith.cmpi eq, %arg2, %c0_i32 : i32
    %3 = arith.extui %2 : i1 to i32
    %c0_i32_0 = arith.constant 0 : i32
    %4 = arith.cmpi ne, %3, %c0_i32_0 : i32
    scf.if %4 {
      %cst = arith.constant 0.000000e+00 : f32
      %11 = vector.broadcast %cst : f32 to vector<8x128xf32>
      %c0 = arith.constant 0 : index
      %c0_4 = arith.constant 0 : index
      %12 = vector.load %arg8[%c0, %c0_4] : memref<8x128xf32, #tpu.memory_space<vmem>>, vector<8x128xf32>
      tpu.vector_store %arg8[%c0, %c0_4], %11 {strides = array<i32>} : memref<8x128xf32, #tpu.memory_space<vmem>>, vector<8x128xf32>,
    } else {
    }
    %5 = arith.cmpi slt, %arg2, %1 : i32
    %6 = arith.extui %5 : i1 to i32
    %c0_i32_1 = arith.constant 0 : i32
    %7 = arith.cmpi ne, %6, %c0_i32_1 : i32
    scf.if %7 {
      %c0 = arith.constant 0 : index
      %c0_4 = arith.constant 0 : index
      %11 = vector.load %arg8[%c0, %c0_4] : memref<8x128xf32, #tpu.memory_space<vmem>>, vector<8x128xf32>
      %c0_5 = arith.constant 0 : index
      %c0_6 = arith.constant 0 : index
      %c0_7 = arith.constant 0 : index
      %12 = vector.load %arg4[%c0_5, %c0_6, %c0_7] : memref<1x8x256xbf16, #tpu.memory_space<vmem>>, vector<1x8x256xbf16>
      %13 = vector.shape_cast %12 : vector<1x8x256xbf16> to vector<8x256xbf16>
      %c0_8 = arith.constant 0 : index
      %c0_9 = arith.constant 0 : index
      %c0_10 = arith.constant 0 : index
      %14 = vector.load %arg5[%c0_8, %c0_9, %c0_10] : memref<1x256x128xbf16, #tpu.memory_space<vmem>>, vector<1x256x128xbf16>
      %15 = vector.shape_cast %14 : vector<1x256x128xbf16> to vector<256x128xbf16>
      %cst = arith.constant dense<0.000000e+00> : vector<8x128xf32>
      %16 = tpu.matmul %13, %15, %cst {dimension_numbers = #tpu.dot_dimension_numbers<[1], [0], [0], [1], [0, 0, 1, 1], [], []>} : vector<8x256xbf16>, vector<256x128xbf16>, vector<8x128xf32> -> vector<8x128xf32>
      %17 = arith.addf %11, %16 : vector<8x128xf32>
      %c0_11 = arith.constant 0 : index
      %c0_12 = arith.constant 0 : index
      %18 = vector.load %arg8[%c0_11, %c0_12] : memref<8x128xf32, #tpu.memory_space<vmem>>, vector<8x128xf32>
      tpu.vector_store %arg8[%c0_11, %c0_12], %17 {strides = array<i32>} : memref<8x128xf32, #tpu.memory_space<vmem>>, vector<8x128xf32>,
    } else {
    }
    %c0_i32_2 = arith.constant 0 : i32
    %8 = arith.cmpi eq, %arg2, %c0_i32_2 : i32
    %9 = arith.extui %8 : i1 to i32
    %c0_i32_3 = arith.constant 0 : i32
    %10 = arith.cmpi ne, %9, %c0_i32_3 : i32
    scf.if %10 {
      %c0 = arith.constant 0 : index
      %c0_4 = arith.constant 0 : index
      %11 = vector.load %arg8[%c0, %c0_4] : memref<8x128xf32, #tpu.memory_space<vmem>>, vector<8x128xf32>
      %12 = tpu.iota {dimensions = array<i32: 1>} : vector<8x128xi32>
      %cst = arith.constant 0.000000e+00 : f32
      %13 = vector.broadcast %cst : f32 to vector<8x128xf32>
      %c0_i32_5 = arith.constant 0 : i32
      %14 = vector.broadcast %c0_i32_5 : i32 to vector<8x128xi32>
      %15 = arith.cmpi sge, %12, %14 : vector<8x128xi32>
      %c4_i32 = arith.constant 4 : i32
      %16 = vector.broadcast %c4_i32 : i32 to vector<8x128xi32>
      %17 = arith.cmpi slt, %12, %16 : vector<8x128xi32>
      %18 = arith.andi %15, %17 : vector<8x128xi1>
      %cst_6 = arith.constant 0xFF800000 : f32
      %19 = vector.broadcast %cst_6 : f32 to vector<8x128xf32>
      %20 = arith.select %18, %11, %19 : vector<8x128xi1>, vector<8x128xf32>
      %cst_7 = arith.constant dense<0xFF800000> : vector<8xf32>
      %21 = vector.multi_reduction <maximumf>, %20, %cst_7 [1] : vector<8x128xf32> to vector<8xf32>
      %22 = vector.shape_cast %21 : vector<8xf32> to vector<8x1xf32>
      %23 = vector.broadcast %22 : vector<8x1xf32> to vector<8x128xf32>
      %24 = arith.cmpf oeq, %20, %23 : vector<8x128xf32>
      %c128_i32 = arith.constant 128 : i32
      %25 = vector.broadcast %c128_i32 : i32 to vector<8x128xi32>
      %26 = arith.select %24, %12, %25 : vector<8x128xi1>, vector<8x128xi32>
      %cst_8 = arith.constant dense<2147483647> : vector<8xi32>
      %27 = vector.multi_reduction <minsi>, %26, %cst_8 [1] : vector<8x128xi32> to vector<8xi32>
      %28 = vector.shape_cast %27 : vector<8xi32> to vector<8x1xi32>
      %29 = vector.broadcast %28 : vector<8x1xi32> to vector<8x128xi32>
      %30 = arith.cmpi eq, %12, %29 : vector<8x128xi32>
      %31 = arith.extui %30 : vector<8x128xi1> to vector<8x128xi32>
      %32 = arith.sitofp %31 : vector<8x128xi32> to vector<8x128xf32>
      %33 = arith.addf %13, %32 : vector<8x128xf32>
      %c4_i32_9 = arith.constant 4 : i32
      %34 = vector.broadcast %c4_i32_9 : i32 to vector<8x128xi32>
      %35 = arith.cmpi sge, %12, %34 : vector<8x128xi32>
      %c8_i32 = arith.constant 8 : i32
      %36 = vector.broadcast %c8_i32 : i32 to vector<8x128xi32>
      %37 = arith.cmpi slt, %12, %36 : vector<8x128xi32>
      %38 = arith.andi %35, %37 : vector<8x128xi1>
      %cst_10 = arith.constant 0xFF800000 : f32
      %39 = vector.broadcast %cst_10 : f32 to vector<8x128xf32>
      %40 = arith.select %38, %11, %39 : vector<8x128xi1>, vector<8x128xf32>
      %cst_11 = arith.constant dense<0xFF800000> : vector<8xf32>
      %41 = vector.multi_reduction <maximumf>, %40, %cst_11 [1] : vector<8x128xf32> to vector<8xf32>
      %42 = vector.shape_cast %41 : vector<8xf32> to vector<8x1xf32>
      %43 = vector.broadcast %42 : vector<8x1xf32> to vector<8x128xf32>
      %44 = arith.cmpf oeq, %40, %43 : vector<8x128xf32>
      %c128_i32_12 = arith.constant 128 : i32
      %45 = vector.broadcast %c128_i32_12 : i32 to vector<8x128xi32>
      %46 = arith.select %44, %12, %45 : vector<8x128xi1>, vector<8x128xi32>
      %cst_13 = arith.constant dense<2147483647> : vector<8xi32>
      %47 = vector.multi_reduction <minsi>, %46, %cst_13 [1] : vector<8x128xi32> to vector<8xi32>
      %48 = vector.shape_cast %47 : vector<8xi32> to vector<8x1xi32>
      %49 = vector.broadcast %48 : vector<8x1xi32> to vector<8x128xi32>
      %50 = arith.cmpi eq, %12, %49 : vector<8x128xi32>
      %51 = arith.extui %50 : vector<8x128xi1> to vector<8x128xi32>
      %52 = arith.sitofp %51 : vector<8x128xi32> to vector<8x128xf32>
      %53 = arith.addf %33, %52 : vector<8x128xf32>
      %c8_i32_14 = arith.constant 8 : i32
      %54 = vector.broadcast %c8_i32_14 : i32 to vector<8x128xi32>
      %55 = arith.cmpi sge, %12, %54 : vector<8x128xi32>
      %c12_i32 = arith.constant 12 : i32
      %56 = vector.broadcast %c12_i32 : i32 to vector<8x128xi32>
      %57 = arith.cmpi slt, %12, %56 : vector<8x128xi32>
      %58 = arith.andi %55, %57 : vector<8x128xi1>
      %cst_15 = arith.constant 0xFF800000 : f32
      %59 = vector.broadcast %cst_15 : f32 to vector<8x128xf32>
      %60 = arith.select %58, %11, %59 : vector<8x128xi1>, vector<8x128xf32>
      %cst_16 = arith.constant dense<0xFF800000> : vector<8xf32>
      %61 = vector.multi_reduction <maximumf>, %60, %cst_16 [1] : vector<8x128xf32> to vector<8xf32>
      %62 = vector.shape_cast %61 : vector<8xf32> to vector<8x1xf32>
      %63 = vector.broadcast %62 : vector<8x1xf32> to vector<8x128xf32>
      %64 = arith.cmpf oeq, %60, %63 : vector<8x128xf32>
      %c128_i32_17 = arith.constant 128 : i32
      %65 = vector.broadcast %c128_i32_17 : i32 to vector<8x128xi32>
      %66 = arith.select %64, %12, %65 : vector<8x128xi1>, vector<8x128xi32>
      %cst_18 = arith.constant dense<2147483647> : vector<8xi32>
      %67 = vector.multi_reduction <minsi>, %66, %cst_18 [1] : vector<8x128xi32> to vector<8xi32>
      %68 = vector.shape_cast %67 : vector<8xi32> to vector<8x1xi32>
      %69 = vector.broadcast %68 : vector<8x1xi32> to vector<8x128xi32>
      %70 = arith.cmpi eq, %12, %69 : vector<8x128xi32>
      %71 = arith.extui %70 : vector<8x128xi1> to vector<8x128xi32>
      %72 = arith.sitofp %71 : vector<8x128xi32> to vector<8x128xf32>
      %73 = arith.addf %53, %72 : vector<8x128xf32>
      %c0_19 = arith.constant 0 : index
      %c0_20 = arith.constant 0 : index
      %c0_21 = arith.constant 0 : index
      %74 = vector.load %arg6[%c0_19, %c0_20, %c0_21] : memref<1x8x1xf32, #tpu.memory_space<vmem>>, vector<1x8x1xf32>
      %75 = vector.shape_cast %74 : vector<1x8x1xf32> to vector<8x1xf32>
      %76 = vector.broadcast %75 : vector<8x1xf32> to vector<8x128xf32>
      %77 = arith.mulf %73, %76 : vector<8x128xf32>
      %78 = arith.truncf %77 : vector<8x128xf32> to vector<8x128xbf16>
      %c0_22 = arith.constant 0 : index
      %c0_23 = arith.constant 0 : index
      %c0_24 = arith.constant 0 : index
      %79 = vector.load %arg7[%c0_22, %c0_23, %c0_24] : memref<1x8x128xbf16, #tpu.memory_space<vmem>>, vector<1x8x128xbf16>
      %80 = vector.shape_cast %79 : vector<1x8x128xbf16> to vector<8x128xbf16>
      %81 = vector.shape_cast %78 : vector<8x128xbf16> to vector<1x8x128xbf16>
      tpu.vector_store %arg7[%c0_22, %c0_23, %c0_24], %81 {strides = array<i32>} : memref<1x8x128xbf16, #tpu.memory_space<vmem>>, vector<1x8x128xbf16>,
    } else {
    }
    return
  }
  func.func @transform_0(%arg0: i32, %arg1: i32, %arg2: i32, %arg3: memref<4xi32, #tpu.memory_space<smem>>) -> (i32, i32, i32) {
    %0 = arith.index_cast %arg0 : i32 to index
    %1 = memref.load %arg3[%0] : memref<4xi32, #tpu.memory_space<smem>>
    %c1_i32 = arith.constant 1 : i32
    %2 = arith.subi %1, %c1_i32 : i32
    %3 = arith.minsi %arg2, %2 : i32
    %c0_i32 = arith.constant 0 : i32
    return %arg0, %arg1, %3 : i32, i32, i32
  }
  func.func @transform_1(%arg0: i32, %arg1: i32, %arg2: i32, %arg3: memref<4xi32, #tpu.memory_space<smem>>) -> (i32, i32, i32) {
    %0 = arith.index_cast %arg0 : i32 to index
    %1 = memref.load %arg3[%0] : memref<4xi32, #tpu.memory_space<smem>>
    %c1_i32 = arith.constant 1 : i32
    %2 = arith.subi %1, %c1_i32 : i32
    %3 = arith.minsi %arg2, %2 : i32
    %c0_i32 = arith.constant 0 : i32
    %c0_i32_0 = arith.constant 0 : i32
    return %arg0, %3, %c0_i32 : i32, i32, i32
  }
  func.func @transform_2(%arg0: i32, %arg1: i32, %arg2: i32, %arg3: memref<4xi32, #tpu.memory_space<smem>>) -> (i32, i32, i32) {
    %c0_i32 = arith.constant 0 : i32
    %c0_i32_0 = arith.constant 0 : i32
    return %arg0, %arg1, %c0_i32 : i32, i32, i32
  }
  func.func @transform_3(%arg0: i32, %arg1: i32, %arg2: i32, %arg3: memref<4xi32, #tpu.memory_space<smem>>) -> (i32, i32, i32) {
    %c0_i32 = arith.constant 0 : i32
    %c0_i32_0 = arith.constant 0 : i32
    return %arg0, %arg1, %c0_i32 : i32, i32, i32
  }
}

</mosaic_0001>

<bundles_post_ra>
// kernel: tpu_custom_call.1
= control target key start
LH: loop header
LB: loop body
LE: loop exit
PB: predicated region body
PF: predicated region fallthrough
CT: control target
= control target key end

     0   :  { %s1121_s18 = smov [#allocation4]   ;;  %s1384_s0 = inlined_call_operand.vmem [shape: s32[4], index: 0, kind: input, shape index: {}]   ;;  %s1385_s1 = inlined_call_operand.vmem [shape: bf16[4,8,256], index: 1, kind: input, shape index: {}]   ;;  %s1386_s2 = inlined_call_operand.hbm [shape: bf16[4,256,128], index: 2, kind: input, shape index: {}]   ;;  %s1387_s3 = inlined_call_operand.vmem [shape: f32[4,8,1], index: 3, kind: input, shape index: {}]   ;;  %s1388_s4 = inlined_call_operand.hbm [shape: bf16[4,8,128], index: 4, kind: output, shape index: {}]  }
   0x1   :  { %s10_s17 = sshll.u32 %s1384_s0, 4  ;;  %s11_s17 = int_to_ptr.vmem [resolvable:$true] %s10_s17 }
   0x2   :  { %13 = dma.vmem_to_smem %s11_s17, 16, %s1121_s18, [#allocation3] }
   0x3   :  { %1075 = dma.done.wait [#allocation3], 16 }
   0x4   :  { %1076 = vsyncadd [#allocation3], 4294967280 }
   0x5   :  { %16 = sfence }
   0x6   :  { %17 = vsyncpa [#allocation6], 0 }
   0x7   :  { %19 = vsyncpa [#allocation6 + $0x1], 0 }
   0x8   :  { %20 = vsyncpa [#allocation7], 0 }
   0x9   :  { %22 = vsyncpa [#allocation7 + $0x1], 0  ;;  %s1154_s19 = smov 0   ;;  %s1156_s20 = smov 0  }
   0xa   :  { %s1158_s21 = smov 0   ;;  %s1160_s22 = smov 0  }
   0xb   :  { %s1162_s23 = smov 0   ;;  %s1164_s0 = smov 0  }
   0xc   :  { %s1166_s24 = smov 0   ;;  %s1168_s25 = smov 0  }
   0xd   :  { %s1170_s26 = smov 0  }
   0xe LB: > { %1392 = sst [smem:[#allocation14_spill]] %s1107_s0  ;;  %s47_s27 = sadd.s32 1, %s1115_s25  ;;  %s1119_s26 = sphi %s1170_s26, %s28_s26   ;;  %s1115_s25 = sphi %s1168_s25, %s1406_s25   ;;  %s1111_s24 = sphi %s1166_s24, %s1405_s24   ;;  %s1107_s0 = sphi %s1164_s0, %s1404_s0   ;;  %s1103_s23 = sphi %s1162_s23, %s1411_s23   ;;  %s1099_s22 = sphi %s1160_s22, %s1410_s22   ;;  %s1095_s21 = sphi %s1158_s21, %s1409_s21   ;;  %s1091_s20 = sphi %s1156_s20, %s1408_s20   ;;  %s1087_s19 = sphi %s1154_s19, %s1407_s19  }
   0xf   : > { %1393 = sst [smem:[#allocation15_spill]] %s1115_s25  ;;  %s757_s29 = sadd.s32 4294967295, %s1119_s26  }
  0x10   : > { %s89_s28 = sld [smem:[#allocation4 + %s1115_s25]]  ;;  %p49_p0 = scmp.ge.s32.totalorder %s47_s27, 4 }
  0x11   : > { %s758_s30 = sadd.s32 4294967294, %s1119_s26   ;;  %p109_p1 = scmp.ne.s32.totalorder %s1107_s0, %s1103_s23 }
  0x12   : > { %s1413_s27 = smov (%p49_p0, %s47_s27), 0  ;;  %p110_p2 = scmp.eq.s32.totalorder %s1119_s26, 0 }
  0x13   : > { %1394 = sst [smem:[#allocation16_spill]] %s1413_s27  ;;  %p115_p3 = scmp.ne.s32.totalorder %s1103_s23, %s1099_s22 }
  0x14   : > { %s93_s5 = sld [smem:[#allocation4 + %s1413_s27]]  ;;  %s97_s6 = ssub.s32 %s1115_s25, %s1413_s27 }
  0x15   : > { %p116_p4 = scmp.eq.s32.totalorder %s757_s29, 0  ;;  %p156_p6 = scmp.eq.s32.totalorder %s97_s6, 0 }
  0x16   : > { %s763_s7 = sadd.s32 4294967295, %s89_s28  ;;  %s158_s9 = sadd.s32 1, %s1095_s21 }
  0x17   : > { %p764_p5 = scmp.gt.s32.totalorder %s763_s7, 0  ;;  %p1210_p7 = por %p116_p4, %p115_p3 }
  0x18   : > { %s1216_s10 = scalar_select %p156_p6, %s1095_s21, %s158_s9  }
  0x19   : > { %s1415_s7 = smov (%p764_p5, %s763_s7), 0  ;;  %p168_p8 = scmp.ne.s32.totalorder %s1095_s21, %s1091_s20 }
  0x1a   : > { %1396 = sst [smem:[#allocation17_spill]] %s1216_s10  ;;  %s765_s11 = sadd.s32 4294967295, %s93_s5 }
  0x1b   : > { %p766_p9 = scmp.gt.s32.totalorder %s765_s11, 0  ;;  %p169_p10 = scmp.eq.s32.totalorder %s757_s29, 3 }
  0x1c   : > { %p174_p11 = scmp.ne.s32.totalorder %s1091_s20, %s1087_s19  ;;  %p175_p12 = scmp.eq.s32.totalorder %s758_s30, 3 }
  0x1d   : > { %s1417_s11 = smov (%p766_p9, %s765_s11), 0  ;;  %p1222_p13 = por %p169_p10, %p168_p8 }
  0x1e   : > { %p1226_p0 = por %p175_p12, %p174_p11  ;;  %s98_s14 = ssub.s32 %s1415_s7, %s1417_s11 }
  0x1f   : > { %s99_s15 = sor.u32 %s98_s14, %s97_s6  ;;  %s102_s16 = sadd.s32 1, %s1107_s0 }
  0x20   : > { %p100_p3 = scmp.eq.s32.totalorder %s99_s15, 0  ;;  %p111_p4 = por %p110_p2, %p109_p1 }
  0x21   : > { %p889_p5 = scmp.lt.s32.totalorder %s1119_s26, 4  ;;  %s220_s28 = sand.u32 1, %s1107_s0  }
  0x22   : > { %s1238_s17 = scalar_select %p100_p3, %s1107_s0, %s102_s16  }
  0x23   : > { %s873_s18 = scalar_select %p111_p4, [#allocation4], [#allocation9] }
  0x24   : > { %1399 = sst [smem:[#allocation18_spill]] %s1238_s17  ;;  %p1242_p6 = pnand %p889_p5, %p111_p4 }
  0x25   : > { %s874_s22 = scalar_select %p111_p4, %s1115_s25, 0 }
  0x26   : > { %s1419_s18 = smov (!%p889_p5, %s873_s18), [#allocation10]  ;;  %s769_s5 = sshll.u32 %s220_s28, 7 }
  0x27   : > { %s1421_s22 = smov (!%p889_p5, %s874_s22), 0  ;;  %p775_p8 = scmp.ge.s32.totalorder %s1119_s26, 1 }
  0x28   : > { %s225_s30 = sld [smem:[%s1419_s18 + %s1421_s22]]  ;;  %p256_p9 = scmp.lt.s32.totalorder %s1119_s26, 5 }
  0x29   : > { %s773_s9 = sshll.u32 %s1115_s25, 5  ;;  %s224_s11 = scalar_lea.vmem [#allocation5], %s769_s5 }
  0x2a   : > { %p1248_p10 = pnand %p775_p8, %p256_p9  ;;  %s1253_s14 = sshll.u32 %s224_s11, 4  ;;  %s239_s14 = int_to_ptr.vmem [resolvable:$true] %s1253_s14 }
  0x2b   : > { %s221_s10 = scalar_lea.sflag [#allocation6], %s220_s28  ;;  %p985_p11 = pneg %p1242_p6 }
  0x2e   : > { %s770_s7 = sadd.s32 4294967295, %s225_s30 }
  0x2f   : > { %p771_p1 = scmp.gt.s32.totalorder %s770_s7, 0 }
  0x31   : > { %s1423_s7 = smov (%p771_p1, %s770_s7), 0 }
  0x32   : > { %s772_s15 = sshll.u32 %s1423_s7, 5 }
  0x33   : > { %s233_s16 = sadd.s32 %s773_s9, %s772_s15  ;;  %s988_s9 = scalar_lea.hbm %s1386_s2, 512 }
  0x34   : > { %s774_s18 = sshll.u32 %s233_s16, 2 }
  0x35   : > { %s235_s17 = scalar_lea.hbm %s1386_s2, %s774_s18 }
  0x36   : > { %s236_s0 = sshll.u32 %s235_s17, 4  ;;  %s237_s0 = int_to_ptr.hbm [resolvable:$true] %s236_s0 }
  0x37   : > { %s981_s30 = sshra.s32 %s237_s0, 4  ;;  %s982_s30 = int_to_ptr.hbm [resolvable:$true] %s981_s30 }
  0x38   : > { %s983_s25 = scalar_lea.hbm %s982_s30, 128  ;;  %p989_p4 = scmp.lt.s32.totalorder %s982_s30, %s1386_s2 }
  0x39   : > { %p984_p2 = scmp.ne.s32.totalorder %s982_s30, %s983_s25  ;;  %p990_p5 = scmp.lt.s32.totalorder %s988_s9, %s983_s25 }
  0x3b   : > { %p986_p12 = pnand %p985_p11, %p984_p2  ;;  %p991_p8 = por %p990_p5, %p989_p4 }
  0x3d   : > { %p987_p3 = pneg %p986_p12 }
  0x3f   : > { %p992_p9 = pnand %p991_p8, %p987_p3 }
  0x41   : > { %995 = shalt.err (!%p992_p9)
}
  0x42   : > { %s1122_s27 = smov 64   ;;  %s1123_s17 = smov 4  }
  0x43   : > { %884 = dma.hbm_to_vmem [thread:$0]  (!%p1242_p6), %s237_s0, 2048, %s239_s14, %s221_s10, %s1122_s27, %s1122_s27, %s1123_s17  }
  0x44   : > { %260 = sbr.rel (%p1248_p10) target bundleno = 652 (0x28c), region = 32  ;;  %s262_s28 = sand.u32 (!%p1248_p10), 1, %s1103_s23  }
  0x45   : > { %s776_s16 = sshll.u32 (!%p1248_p10), %s262_s28, 7  ;;  %s263_s18 = scalar_lea.sflag (!%p1248_p10), [#allocation6], %s262_s28 }
  0x46   : > { %s1272_s22 = scalar_lea.vmem (!%p1248_p10), [#allocation5], %s776_s16 }
  0x49   : > { %1078 = dma.done.wait (%p1210_p7), %s263_s18, 2048  }
  0x4a   : > { %1080 = vsyncadd (%p1210_p7), %s263_s18, 4294965248  ;;  %p319_p6 = scmp.lt.s32.totalorder %s1111_s24, 3  ;;  %s311_s0 = sand.u32 1, %s1091_s20   ;;  %v1124_v0 = vmov 0.0  }
  0x4b   : > { %s314_s25 = sld [smem:[#allocation4 + %s1111_s24]]  ;;  %s1283_s10 = sshll.u32 %s311_s0, 2  ;;  %353 = vst [vmem:[#allocation2] sm:$0xff] %v1124_v0 }
  0x4c   : > { %s320_s29 = scalar_select %p319_p6, %s1111_s24, 3 }
  0x4d   : > { %s348_s6 = sld [smem:[#allocation4 + %s1111_s24]]  ;;  %s313_s18 = scalar_lea.vmem [#allocation8], %s1283_s10 }
  0x4e   : > { %s783_s8 = sshll.u32 %s320_s29, 3  ;;  %s781_s11 = sshll.u32 %s320_s29, 1 }
  0x4f   : > { %s1291_s5 = scalar_lea.vmem %s1387_s3, %s783_s8 }
  0x51   : > { %s778_s7 = sadd.s32 4294967295, %s314_s25 }
  0x52   : > { %p779_p7 = scmp.gt.s32.totalorder %s778_s7, 0 }
  0x53   : > { %p785_p1 = scmp.le.s32.totalorder %s348_s6, 0 }
  0x54   : > { %s1425_s7 = smov (%p779_p7, %s778_s7), 0 }
  0x55   : > { %s780_s9 = sshll.u32 %s1425_s7, 1 }
  0x56   : > { %p323_p10 = scmp.lt.s32.totalorder %s780_s9, 1 }
  0x57   : > { %357 = sbr.rel (%p785_p1) target bundleno = 259 (0x103), region = 44 }
  0x58   : > { %s1427_s9 = smov (!%p323_p10, %s780_s9), 1 }
  0x59   : > { %s328_s15 = sadd.s32 %s781_s11, %s1427_s9 }
  0x5a   : > { %s782_s27 = sshll.u32 %s328_s15, 2 }
  0x5b   : > { %s1296_s16 = scalar_lea.vmem %s1385_s1, %s782_s27 }
  0x5c   : > { %v864_v1 = vld [vmem:[%s1272_s22 + $0x38] sm:$0xff]  ;;  %v863_v3 = vld [vmem:[%s1272_s22 + $0x30] sm:$0xff]  ;;  %v862_v5 = vld [vmem:[%s1272_s22 + $0x28] sm:$0xff] }
  0x5d   : > { %v872_v2 = vld [vmem:[%s1272_s22 + $0x78] sm:$0xff]  ;;  %495 = vmatpush.bf16.msra.mxu0 %v864_v1  ;;  %v871_v4 = vld [vmem:[%s1272_s22 + $0x70] sm:$0xff]  ;;  %v870_v6 = vld [vmem:[%s1272_s22 + $0x68] sm:$0xff] }
  0x5e   : > { %508 = vmatpush.bf16.msra.mxu1 %v872_v2  ;;  %v861_v7 = vld [vmem:[%s1272_s22 + $0x20] sm:$0xff]  ;;  %v860_v9 = vld [vmem:[%s1272_s22 + $0x18] sm:$0xff]  ;;  %v859_v11 = vld [vmem:[%s1272_s22 + $0x10] sm:$0xff] }
  0x5f   : > { %v869_v8 = vld [vmem:[%s1272_s22 + $0x60] sm:$0xff]  ;;  %v868_v10 = vld [vmem:[%s1272_s22 + $0x58] sm:$0xff]  ;;  %v867_v12 = vld [vmem:[%s1272_s22 + $0x50] sm:$0xff] }
  0x60   : > { %v858_v13 = vld [vmem:[%s1272_s22 + $0x8] sm:$0xff]  ;;  %v359_v15 = vld [vmem:[%s1296_s16] sm:$0xff]  ;;  %v857_v18 = vld [vmem:[%s1272_s22] sm:$0xff] }
  0x61   : > { %496 = vmatpush.bf16.msra.mxu0 %v863_v3  ;;  %v866_v14 = vld [vmem:[%s1272_s22 + $0x48] sm:$0xff]  ;;  %v393_v16 = vunpack.c.l.b16 %v359_v15  ;;  %v394_v17 = vunpack.c.h.b16 %v359_v15  ;;  %v865_v19 = vld [vmem:[%s1272_s22 + $0x40] sm:$0xff]  ;;  %v358_v23 = vld [vmem:[#allocation2] sm:$0xff] }
  0x62   : > { %509 = vmatpush.bf16.msra.mxu1 %v871_v4 }
  0x63   : > { %v395_v20 = vpack.c.b16 %v393_v16, %v393_v16  ;;  %v396_v21 = vpack.c.b16 %v394_v17, %v394_v17 }
  0x65   : > { %497 = vmatpush.bf16.msra.mxu0 %v862_v5 }
  0x66   : > { %510 = vmatpush.bf16.msra.mxu1 %v870_v6 }
  0x69   : > { %498 = vmatpush.bf16.msra.mxu0 %v861_v7 }
  0x6a   : > { %511 = vmatpush.bf16.msra.mxu1 %v869_v8 }
  0x6d   : > { %499 = vmatpush.bf16.msra.mxu0 %v860_v9 }
  0x6e   : > { %512 = vmatpush.bf16.msra.mxu1 %v868_v10 }
  0x71   : > { %500 = vmatpush.bf16.msra.mxu0 %v859_v11 }
  0x72   : > { %513 = vmatpush.bf16.msra.mxu1 %v867_v12 }
  0x75   : > { %501 = vmatpush.bf16.msra.mxu0 %v858_v13 }
  0x76   : > { %514 = vmatpush.bf16.msra.mxu1 %v866_v14 }
  0x79   : > { %502 = vmatpush.bf16.msra.mxu0 %v857_v18 }
  0x7a   : > { %515 = vmatpush.bf16.msra.mxu1 %v865_v19 }
  0x7c   : > { %503 = vmatmul.bf16.vlgmr.msra.gmra.mxu0 %v395_v20 }
  0x7d   : > { %516 = vmatmul.bf16.vlgmr.msra.gmra.mxu1 %v396_v21 }
  0xf9   : > { %v504_v22 = vpop.f32.mrf.mxu0 }
  0xfa   : > { %v517_v24 = vpop.f32.mrf.mxu1 }
  0xfb   : > { %v518_v25 = vadd.f32 %v517_v24, %v504_v22 }
  0xfd   : > { %v521_v26 = vadd.f32 %v518_v25, %v358_v23 }
  0xff   : > { %522 = vst [vmem:[#allocation2] sm:$0xff] %v521_v26 }
 0x101   : > { %v506_v27 = vpop.f32.mrf.mxu0 }
 0x102   : > { %v519_v28 = vpop.f32.mrf.mxu1 }
 0x103 PF: > { %v527_v29 = vlaneseq  ;;  %v1125_v47 = vmov 0   ;;  %v607_v60 = vld [vmem:[%s1291_s5] sm:$0xff]  ;;  %s854_s22 = sshll.u32 %s1111_s24, 2  ;;  %s630_s8 = sshll.u32 %s313_s18, 4  ;;  %s631_s8 = int_to_ptr.vmem [resolvable:$true] %s630_s8 }
 0x104   : > { %968 = vset.pattern.permute.xlu0 %v1125_v47  ;;  %s628_s6 = scalar_lea.hbm %s1388_s4, %s854_s22  ;;  %s617_s24 = scalar_lea.sflag [#allocation7], %s311_s0 }
 0x105   : > { %v1316_v31 = vand.u32 127, %v527_v29  ;;  %s632_s14 = sshll.u32 %s628_s6, 4  ;;  %s1031_s11 = scalar_lea.hbm %s1388_s4, 16  ;;  %s633_s14 = int_to_ptr.hbm [resolvable:$true] %s632_s14 }
 0x106   : > { %v526_v30 = vld [vmem:[#allocation2] sm:$0xff]  ;;  %s1025_s30 = sshra.s32 %s633_s14, 4  ;;  %s1026_s30 = int_to_ptr.hbm [resolvable:$true] %s1025_s30 }
 0x107   : > { %vm530_vm0 = vcmp.lt.s32.totalorder %v1316_v31, 4  ;;  %vm581_vm1 = vcmp.ge.s32.totalorder %v1316_v31, 8  ;;  %vm555_vm2 = vcmp.ge.s32.totalorder %v1316_v31, 4  ;;  %vm556_vm3 = vcmp.lt.s32.totalorder %v1316_v31, 8  ;;  %s1027_s5 = scalar_lea.hbm %s1026_s30, 4  ;;  %p1032_p3 = scmp.lt.s32.totalorder %s1026_s30, %s1388_s4 }
 0x108   : > { %v532_v32 = vsel %vm530_vm0, %v526_v30, -inf  ;;  %vm582_vm4 = vcmp.lt.s32.totalorder %v1316_v31, 12  ;;  %vm557_vm6 = vmand %vm555_vm2, %vm556_vm3  ;;  %p1028_p2 = scmp.ne.s32.totalorder %s1026_s30, %s1027_s5  ;;  %p1033_p4 = scmp.lt.s32.totalorder %s1031_s11, %s1027_s5 }
 0x109   : > { %533 = vmax.xlane.f32.xlu0 %v532_v32  ;;  %vm583_vm5 = vmand %vm581_vm1, %vm582_vm4  ;;  %v558_v34 = vsel %vm557_vm6, %v526_v30, -inf }
 0x10a   : > { %v584_v33 = vsel %vm583_vm5, %v526_v30, -inf  ;;  %p1029_p11 = pnand %p1028_p2, %p1222_p13  ;;  %p1034_p5 = por %p1033_p4, %p1032_p3 }
 0x10b   : > { %585 = vmax.xlane.f32.xlu1 %v584_v33 }
 0x10c   : > { %p1030_p12 = pneg %p1029_p11 }
 0x10e   : > { %p1035_p8 = pnand %p1034_p5, %p1030_p12 }
 0x111   : > { %559 = vmax.xlane.f32.xlu0 %v558_v34 }
 0x17c   : > { %v534_v35 = vpop.xlane.xlu0 %533 }
 0x17d   : > { %vm535_vm7 = vcmp.eq.f32.partialorder %v532_v32, %v534_v35 }
 0x17e   : > { %v536_v36 = vsel %vm535_vm7, %v1316_v31, 128  ;;  %v586_v39 = vpop.xlane.xlu1 %585 }
 0x17f   : > { %v538_v37 = vshra.s32 %v536_v36, 16  ;;  %vm587_vm9 = vcmp.eq.f32.partialorder %v584_v33, %v586_v39  ;;  %v537_v48 = vand.u32 65535, %v536_v36 }
 0x180   : > { %v588_v43 = vsel %vm587_vm9, %v1316_v31, 128 }
 0x181   : > { %v540_v38 = vcvt.s32.f32 %v538_v37  ;;  %v590_v45 = vshra.s32 %v588_v43, 16  ;;  %v539_v50 = vcvt.s32.f32 %v537_v48  ;;  %v589_v56 = vand.u32 65535, %v588_v43 }
 0x183   : > { %541 = vmin.xlane.f32.xlu1 %v540_v38  ;;  %v592_v46 = vcvt.s32.f32 %v590_v45  ;;  %v591_v58 = vcvt.s32.f32 %v589_v56 }
 0x184   : > { %v560_v40 = vpop.xlane.xlu0 %559 }
 0x185   : > { %vm561_vm8 = vcmp.eq.f32.partialorder %v558_v34, %v560_v40 }
 0x186   : > { %v562_v41 = vsel %vm561_vm8, %v1316_v31, 128 }
 0x187   : > { %v564_v42 = vshra.s32 %v562_v41, 16  ;;  %v563_v52 = vand.u32 65535, %v562_v41 }
 0x189   : > { %v566_v44 = vcvt.s32.f32 %v564_v42  ;;  %v565_v54 = vcvt.s32.f32 %v563_v52 }
 0x18b   : > { %567 = vmin.xlane.f32.xlu2 %v566_v44 }
 0x193   : > { %593 = vmin.xlane.f32.xlu2 %v592_v46 }
 0x1f6   : > { %v542_v49 = vpop.xlane.xlu1 %541 }
 0x1f7   : > { %vm543_vm10 = vcmp.eq.f32.partialorder %v540_v38, %v542_v49  ;;  %v548_v63 = vcvt.f32.s32 %v542_v49 }
 0x1f8   : > { %v544_v51 = vsel %vm543_vm10, %v539_v50, inf }
 0x1f9   : > { %545 = vmin.xlane.f32.xlu0 %v544_v51  ;;  %v549_v5 = vshll.u32 %v548_v63, 16 }
 0x1fe   : > { %v568_v53 = vpop.xlane.xlu2 %567 }
 0x1ff   : > { %vm569_vm11 = vcmp.eq.f32.partialorder %v566_v44, %v568_v53  ;;  %v574_v61 = vcvt.f32.s32 %v568_v53 }
 0x200   : > { %v570_v55 = vsel %vm569_vm11, %v565_v54, inf }
 0x201   : > { %571 = vmin.xlane.f32.xlu1 %v570_v55  ;;  %v575_v2 = vshll.u32 %v574_v61, 16 }
 0x206   : > { %v594_v57 = vpop.xlane.xlu2 %593 }
 0x207   : > { %vm595_vm12 = vcmp.eq.f32.partialorder %v592_v46, %v594_v57  ;;  %v600_v7 = vcvt.f32.s32 %v594_v57 }
 0x208   : > { %v596_v59 = vsel %vm595_vm12, %v591_v58, inf }
 0x209   : > { %597 = vmin.xlane.f32.xlu2 %v596_v59  ;;  %v601_v10 = vshll.u32 %v600_v7, 16 }
 0x20d   : > { %610 = vperm.xlu0 %968, %v607_v60  }
 0x26c   : > { %v546_v62 = vpop.xlane.xlu0 %545 }
 0x26d   : > { %v547_v3 = vcvt.f32.s32 %v546_v62 }
 0x26f   : > { %v550_v8 = vadd.s32 %v549_v5, %v547_v3 }
 0x271   : > { %vm551_vm14 = vcmp.eq.s32.totalorder %v1316_v31, %v550_v8 }
 0x272   : > { %v850_v14 = vsel %vm551_vm14, 1.0, %v1124_v0 }
 0x274   : > { %v572_v1 = vpop.xlane.xlu1 %571 }
 0x275   : > { %v573_v4 = vcvt.f32.s32 %v572_v1 }
 0x277   : > { %v576_v6 = vadd.s32 %v575_v2, %v573_v4 }
 0x279   : > { %vm577_vm13 = vcmp.eq.s32.totalorder %v1316_v31, %v576_v6 }
 0x27a   : > { %v851_v12 = vsel %vm577_vm13, 1.0, %v1124_v0 }
 0x27b   : > { %v580_v15 = vadd.f32 %v851_v12, %v850_v14 }
 0x27c   : > { %v598_v9 = vpop.xlane.xlu2 %597 }
 0x27d   : > { %v599_v11 = vcvt.f32.s32 %v598_v9 }
 0x27f   : > { %v602_v13 = vadd.s32 %v601_v10, %v599_v11  ;;  %v611_v17 = vpop.permute.xlu0 %610 }
 0x281   : > { %vm603_vm15 = vcmp.eq.s32.totalorder %v1316_v31, %v602_v13 }
 0x282   : > { %v852_v16 = vsel %vm603_vm15, 1.0, %v1124_v0 }
 0x283   : > { %v606_v18 = vadd.f32 %v852_v16, %v580_v15 }
 0x285   : > { %v613_v19 = vmul.f32 %v611_v17, %v606_v18 }
 0x287   : > { %v614_v20 = vpack.c.bf16 %v613_v19, %v613_v19 }
 0x289   : > { %615 = vst [vmem:[%s313_s18] sm:$0xf] %v614_v20 }
 0x28a   : > { %1038 = shalt.err (!%p1035_p8)
}
 0x28b   : > { %877 = dma.vmem_to_hbm [thread:$0]  (%p1222_p13), %s631_s8, 64, %s633_s14, %s617_s24  }
 0x28c PF: > { %p890_p9 = scmp.ge.s32.totalorder %s1119_s26, 2  ;;  %s644_s0 = sand.u32 1, %s1087_s19  }
 0x28d   : > { %s645_s10 = scalar_lea.sflag [#allocation7], %s644_s0 }
 0x28e   : > { %p886_p6 = pnand %p890_p9, %p1226_p0 }
 0x290   : > { %p887_p7 = pneg %p886_p6 }
 0x292   : > { %1082 = dma.done.wait (%p887_p7), %s645_s10, 64  }
 0x293   : > { %1084 = vsyncadd (%p887_p7), %s645_s10, 4294967232  ;;  %s28_s26 = sadd.s32 1, %s1119_s26   ;;  %s1402_s17 = sld [smem:[#allocation17_spill]] }
 0x294   : > { %p25_p10 = scmp.ge.s32.totalorder %s28_s26, 6   ;;  %s1403_s12 = sld [smem:[#allocation14_spill]] }
 0x295   : > { %s1404_s0 = sld [smem:[#allocation18_spill]]  ;;  %s1407_s19 = smov %s1091_s20 }
 0x296   : > { %s1405_s24 = sld [smem:[#allocation15_spill]]  ;;  %s1408_s20 = smov %s1095_s21 }
 0x297   : > { %s1406_s25 = sld [smem:[#allocation16_spill]]  ;;  %s1410_s22 = smov %s1103_s23 }
 0x298   :  { %27 = sbr.rel (!%p25_p10) target bundleno = 14 (0xe), region = 95 }
 0x299   : > { %s1409_s21 = smov %s1402_s17 }
 0x29a   : > { %s1411_s23 = smov %s1403_s12 }
 0x29d   :  { %651 = vsyncpa [#allocation6], 1 }
 0x29e   :  { %653 = vsyncpa [#allocation6 + $0x1], 1 }
 0x29f   :  { %654 = vsyncpa [#allocation7], 1 }
 0x2a0   :  { %656 = vsyncpa [#allocation7 + $0x1], 1 }

</bundles_post_ra>
